<compile_context>
chip_gen: v6e
topology: v6e:2x2x1
jax: 0.10.0
libtpu: 0.0.40
codegen_flags: <defaults>
</compile_context>

<pallas_src>
import functools
import math

import jax
import jax.numpy as jnp
from jax.experimental import pallas as pl
from jax.experimental.pallas import tpu as pltpu


def _round_up(x, m):
    return ((x + m - 1) // m) * m


def _block_bytes(shape, dtype):
    """Upper-bound VMEM bytes of one buffered block (lane/sublane padded)."""
    itemsize = jnp.dtype(dtype).itemsize
    sub = 8 * max(1, 4 // itemsize)          # 8 (f32), 16 (bf16), 32 (i8)
    dims = list(shape)
    dims[-1] = _round_up(dims[-1], 128)
    if len(dims) >= 2:
        dims[-2] = _round_up(dims[-2], sub)
    return math.prod(dims) * itemsize


def _pp_kernel(emit_local, act_ref, w_ref, b_ref, rt_ref, glob_ref, *loc_refs):
    # Linear layer (MXU): [TM, C] @ [C, OUT] (+ bias), f32 accumulation.
    local = jnp.dot(act_ref[...], w_ref[...],
                    preferred_element_type=jnp.float32) + b_ref[...]
    hp = local.shape[-1] // 3
    lx = local[:, 0 * hp:1 * hp]
    ly = local[:, 1 * hp:2 * hp]
    lz = local[:, 2 * hp:3 * hp]

    rt = rt_ref[...]  # [TM, 12] = rot(xx,xy,xz,yx,yy,yz,zx,zy,zz) ++ trans(x,y,z)

    # Rigid3Array.apply: global = R @ local + t  (per-row 3x3, broadcast over H*P)
    gx = rt[:, 0:1] * lx + rt[:, 1:2] * ly + rt[:, 2:3] * lz + rt[:, 9:10]
    gy = rt[:, 3:4] * lx + rt[:, 4:5] * ly + rt[:, 5:6] * lz + rt[:, 10:11]
    gz = rt[:, 6:7] * lx + rt[:, 7:8] * ly + rt[:, 8:9] * lz + rt[:, 11:12]

    # Single full-block slab store (v5e has only one vst slot per bundle).
    glob_ref[...] = jnp.concatenate([gx, gy, gz], axis=-1).astype(glob_ref.dtype)
    if emit_local:
        loc_refs[0][...] = local.astype(loc_refs[0].dtype)


def point_projection(activations, rot, trans, weight, bias, *,
                     no_heads, num_points, use_high_precision,
                     return_local_points=False, tile_m=2048,
                     out_dtype=jnp.float32, layout="points"):
    """PointProjection forward.

    activations: [*, C]  (kernel consumes this dtype directly — pass bf16 from
                          the producer to halve the dominant N*C HBM read;
                          MXU accumulation is always f32)
    rot:   [*, 3, 3]   trans: [*, 3]   (kept in f32)
    weight: [C, H*3*P] (torch weight transposed, raw torch column order)
    bias:   [H*3*P]
    layout: "points"     -> [*, H, P, 3] (module-compatible, extra transpose pass)
            "axis_major" -> [*, 3, H, P] (free reshape; consumer fuses the perm)
    """
    assert layout in ("points", "axis_major")
    lead = activations.shape[:-1]
    C = activations.shape[-1]
    H, P = no_heads, num_points
    HP = H * P
    OUT = 3 * HP
    N = math.prod(lead)
    act_dtype = activations.dtype

    act2 = activations.reshape(N, C)                      # metadata-only reshape
    # Fused rigid side input: one small (N,12) DMA stream.
    rt2 = jnp.concatenate([rot.reshape(N, 9).astype(jnp.float32),
                           trans.reshape(N, 3).astype(jnp.float32)], axis=-1)

    # Permute linear output columns to axis-major [3, H, P]:
    if use_high_precision:
        # torch path: raw col = h*3P + axis*P + p   (view [H, 3P] then split)
        w_perm = weight.reshape(C, H, 3, P).transpose(0, 2, 1, 3).reshape(C, OUT)
        b_perm = bias.reshape(H, 3, P).transpose(1, 0, 2).reshape(OUT)
    else:
        # torch path: raw col = axis*HP + h*P + p   (already axis-major)
        w_perm, b_perm = weight, bias
    w_perm = w_perm.astype(act_dtype)          # resident & tiny; cast is cheap
    b2 = b_perm.reshape(1, OUT).astype(jnp.float32)

    # ---- tile selection --------------------------------------------------
    tm = max(8, min(_round_up(tile_m, 8), _round_up(N, 8)))
    # v7x: keep >= 4 grid steps so the "parallel" axis shards across both
    # TensorCores, but never shrink below 256 rows (per-step overhead).
    quarter = _round_up(pl.cdiv(N, 4), 8)
    if quarter >= 256:
        tm = min(tm, quarter)

    n_out = 2 if return_local_points else 1

    def footprint(tm_):
        return (2 * (_block_bytes((tm_, C), act_dtype)
                     + _block_bytes((tm_, 12), jnp.float32)
                     + n_out * _block_bytes((tm_, OUT), out_dtype))
                + 2 * (_block_bytes((C, OUT), act_dtype)
                       + _block_bytes((1, OUT), jnp.float32)))

    budget = 28 << 20                      # safe on v5e(16 MiB default, raised
    while footprint(tm) > budget and tm > 256:   # via vmem_limit) and v7x(64 MiB)
        tm = max(256, _round_up(tm // 2, 8))

    grid = (pl.cdiv(N, tm),)               # ragged tail handled by Pallas masking
    vmem_limit = int(min(64 << 20,
                         max(32 << 20, int(1.5 * footprint(tm)) + (4 << 20))))

    out_shapes = tuple(jax.ShapeDtypeStruct((N, OUT), out_dtype)
                       for _ in range(n_out))
    out_specs = tuple(pl.BlockSpec((tm, OUT), lambda i: (i, 0))
                      for _ in range(n_out))

    act_b = jnp.dtype(act_dtype).itemsize
    out_b = jnp.dtype(out_dtype).itemsize
    cost = pl.CostEstimate(
        flops=2 * N * C * OUT + 18 * N * HP,
        transcendentals=0,
        bytes_accessed=(N * C * act_b + N * 12 * 4 + C * OUT * act_b
                        + OUT * 4 + n_out * N * OUT * out_b))

    outs = pl.pallas_call(
        functools.partial(_pp_kernel, return_local_points),
        out_shape=out_shapes,
        grid_spec=pltpu.PrefetchScalarGridSpec(
            num_scalar_prefetch=0,
            grid=grid,
            in_specs=[
                pl.BlockSpec((tm, C), lambda i: (i, 0)),    # activations
                pl.BlockSpec((C, OUT), lambda i: (0, 0)),   # weight (resident)
                pl.BlockSpec((1, OUT), lambda i: (0, 0)),   # bias (resident)
                pl.BlockSpec((tm, 12), lambda i: (i, 0)),   # fused rot+trans
            ],
            out_specs=out_specs,
        ),
        compiler_params=pltpu.CompilerParams(
            dimension_semantics=("parallel",),
            vmem_limit_bytes=vmem_limit),
        cost_estimate=cost,
    )(act2, w_perm, b2, rt2)

    if layout == "axis_major":
        conv = lambda flat: flat.reshape(lead + (3, H, P))          # free
    else:
        # axis-major [3,H,P] -> [*,H,P,3]; separate XLA transpose pass that
        # re-reads/writes N*OUT*out_b bytes — use out_dtype=bf16 or
        # layout="axis_major" when downstream tolerates it.
        conv = lambda flat: flat.reshape(N, 3, H, P).transpose(0, 2, 3, 1) \
                                .reshape(lead + (H, P, 3))

    points_global = conv(outs[0])
    if return_local_points:
        return points_global, conv(outs[1])
    return points_global


def point_projection_ref(activations, rot, trans, weight, bias, *,
                         no_heads, num_points, use_high_precision):
    """Pure-JAX replica of the torch forward (raw column order)."""
    H, P = no_heads, num_points
    raw = jnp.einsum('...c,co->...o', activations, weight) + bias
    out_shape = raw.shape[:-1] + (H, P, 3)
    x = raw
    if use_high_precision:
        x = x.reshape(x.shape[:-1] + (H, 3 * P))
    chunks = jnp.split(x, 3, axis=-1)
    local = jnp.stack(chunks, axis=-1).reshape(out_shape)       # [*, H, P, 3]
    glob = jnp.einsum('...ij,...hpj->...hpi', rot, local)
    glob = glob + trans[..., None, None, :]
    return glob


if __name__ == "__main__":
    key = jax.random.PRNGKey(0)
    batch, seq = 2, 8
    c_hidden, no_heads, num_points = 32, 4, 4
    out_feat = no_heads * 3 * num_points

    k1, k2, k3, k4, k5 = jax.random.split(key, 5)
    activations = jax.random.normal(k1, (batch, seq, c_hidden), dtype=jnp.float32)
    weight = 0.05 * jax.random.normal(k2, (c_hidden, out_feat), dtype=jnp.float32)
    bias = 0.01 * jax.random.normal(k3, (out_feat,), dtype=jnp.float32)
    m = jax.random.normal(k4, (batch, seq, 3, 3), dtype=jnp.float32)
    rot, _ = jnp.linalg.qr(m)
    trans = jax.random.normal(k5, (batch, seq, 3), dtype=jnp.float32)

    # 1) f32, default tiling (grid collapses to 1 at this toy size), both
    #    precision flavours, module-compatible layout.
    for uhp in (True, False):
        out = point_projection(activations, rot, trans, weight, bias,
                               no_heads=no_heads, num_points=num_points,
                               use_high_precision=uhp)
        out = jax.block_until_ready(out)
        ref = point_projection_ref(activations, rot, trans, weight, bias,
                                   no_heads=no_heads, num_points=num_points,
                                   use_high_precision=uhp)
        assert out.shape == (batch, seq, no_heads, num_points, 3), out.shape
        assert jnp.allclose(out, ref, atol=1e-5, rtol=1e-5), \
            float(jnp.max(jnp.abs(out - ref)))

    # 2) Ragged-tail path (N=14 rows, tile_m=8 -> grid=2, no wrapper padding),
    #    with return_local_points=True exercising the two-output kernel.
    act_r, rot_r, trans_r = activations[:, :7], rot[:, :7], trans[:, :7]
    outg, outl = point_projection(act_r, rot_r, trans_r, weight, bias,
                                  no_heads=no_heads, num_points=num_points,
                                  use_high_precision=True,
                                  return_local_points=True, tile_m=8)
    outg, outl = jax.block_until_ready((outg, outl))
    refg = point_projection_ref(act_r, rot_r, trans_r, weight, bias,
                                no_heads=no_heads, num_points=num_points,
                                use_high_precision=True)
    assert jnp.allclose(outg, refg, atol=1e-5, rtol=1e-5), \
        float(jnp.max(jnp.abs(outg - refg)))
    # local points == global points under the identity rigid
    eye = jnp.broadcast_to(jnp.eye(3, dtype=jnp.float32), rot_r.shape)
    refl = point_projection_ref(act_r, eye, jnp.zeros_like(trans_r), weight, bias,
                                no_heads=no_heads, num_points=num_points,
                                use_high_precision=True)
    assert jnp.allclose(outl, refl, atol=1e-5, rtol=1e-5), \
        float(jnp.max(jnp.abs(outl - refl)))

    # 3) bf16-at-the-source path (producer emits bf16 activations) with bf16
    #    output writeback — checked loosely against the f32 reference.
    out_bf = point_projection(activations.astype(jnp.bfloat16), rot, trans,
                              weight, bias,
                              no_heads=no_heads, num_points=num_points,
                              use_high_precision=True,
                              out_dtype=jnp.bfloat16)
    out_bf = jax.block_until_ready(out_bf)
    ref = point_projection_ref(activations, rot, trans, weight, bias,
                               no_heads=no_heads, num_points=num_points,
                               use_high_precision=True)
    assert jnp.allclose(out_bf.astype(jnp.float32), ref, atol=1e-1, rtol=1e-1), \
        float(jnp.max(jnp.abs(out_bf.astype(jnp.float32) - ref)))

    # 4) axis-major layout (no post-kernel transpose pass) vs permuted reference.
    out_am = point_projection(activations, rot, trans, weight, bias,
                              no_heads=no_heads, num_points=num_points,
                              use_high_precision=True, layout="axis_major")
    out_am = jax.block_until_ready(out_am)
    ref_am = jnp.moveaxis(ref, -1, -3)          # [*, H, P, 3] -> [*, 3, H, P]
    assert out_am.shape == (batch, seq, 3, no_heads, num_points), out_am.shape
    assert jnp.allclose(out_am, ref_am, atol=1e-5, rtol=1e-5), \
        float(jnp.max(jnp.abs(out_am - ref_am)))

    print("KERNEL_OK")
</pallas_src>

<mosaic_0001>
module attributes {stable_mosaic.version = 11 : i64} {
  func.func @_pp_kernel(%arg0: i32, %arg1: memref<16x32xf32, #tpu.memory_space<vmem>>, %arg2: memref<32x48xf32, #tpu.memory_space<vmem>>, %arg3: memref<1x48xf32, #tpu.memory_space<vmem>>, %arg4: memref<16x12xf32, #tpu.memory_space<vmem>>, %arg5: memref<16x48xf32, #tpu.memory_space<vmem>>) attributes {dimension_semantics = [#tpu.dimension_semantics<parallel>], iteration_bounds = array<i64: 1>, scalar_prefetch = 0 : i64, scratch_operands = 0 : i64, tpu.core_type = #tpu.core_type<tc>, window_params = [{transform_indices = @transform_0, window_bounds = array<i64: 16, 32>}, {pipeline_mode = #tpu.pipeline_mode<synchronous>, transform_indices = @transform_1, window_bounds = array<i64: 32, 48>}, {pipeline_mode = #tpu.pipeline_mode<synchronous>, transform_indices = @transform_2, window_bounds = array<i64: 1, 48>}, {transform_indices = @transform_3, window_bounds = array<i64: 16, 12>}, {transform_indices = @transform_4, window_bounds = array<i64: 16, 48>}]} {
    %c0 = arith.constant 0 : index
    %c0_0 = arith.constant 0 : index
    %0 = vector.load %arg1[%c0, %c0_0] : memref<16x32xf32, #tpu.memory_space<vmem>>, vector<16x32xf32>
    %c0_1 = arith.constant 0 : index
    %c0_2 = arith.constant 0 : index
    %1 = vector.load %arg2[%c0_1, %c0_2] : memref<32x48xf32, #tpu.memory_space<vmem>>, vector<32x48xf32>
    %cst = arith.constant dense<0.000000e+00> : vector<16x48xf32>
    %2 = tpu.matmul %0, %1, %cst {dimension_numbers = #tpu.dot_dimension_numbers<[1], [0], [0], [1], [0, 0, 1, 1], [], []>} : vector<16x32xf32>, vector<32x48xf32>, vector<16x48xf32> -> vector<16x48xf32>
    %c0_3 = arith.constant 0 : index
    %c0_4 = arith.constant 0 : index
    %3 = vector.load %arg3[%c0_3, %c0_4] : memref<1x48xf32, #tpu.memory_space<vmem>>, vector<1x48xf32>
    %4 = vector.broadcast %3 : vector<1x48xf32> to vector<16x48xf32>
    %5 = arith.addf %2, %4 : vector<16x48xf32>
    %6 = vector.extract_strided_slice %5 {offsets = [0, 0], sizes = [16, 16], strides = [1, 1]} : vector<16x48xf32> to vector<16x16xf32>
    %7 = vector.extract_strided_slice %5 {offsets = [0, 16], sizes = [16, 16], strides = [1, 1]} : vector<16x48xf32> to vector<16x16xf32>
    %8 = vector.extract_strided_slice %5 {offsets = [0, 32], sizes = [16, 16], strides = [1, 1]} : vector<16x48xf32> to vector<16x16xf32>
    %c0_5 = arith.constant 0 : index
    %c0_6 = arith.constant 0 : index
    %9 = vector.load %arg4[%c0_5, %c0_6] : memref<16x12xf32, #tpu.memory_space<vmem>>, vector<16x12xf32>
    %10 = vector.extract_strided_slice %9 {offsets = [0, 0], sizes = [16, 1], strides = [1, 1]} : vector<16x12xf32> to vector<16x1xf32>
    %11 = vector.broadcast %10 : vector<16x1xf32> to vector<16x16xf32>
    %12 = arith.mulf %11, %6 : vector<16x16xf32>
    %13 = vector.extract_strided_slice %9 {offsets = [0, 1], sizes = [16, 1], strides = [1, 1]} : vector<16x12xf32> to vector<16x1xf32>
    %14 = vector.broadcast %13 : vector<16x1xf32> to vector<16x16xf32>
    %15 = arith.mulf %14, %7 : vector<16x16xf32>
    %16 = arith.addf %12, %15 : vector<16x16xf32>
    %17 = vector.extract_strided_slice %9 {offsets = [0, 2], sizes = [16, 1], strides = [1, 1]} : vector<16x12xf32> to vector<16x1xf32>
    %18 = vector.broadcast %17 : vector<16x1xf32> to vector<16x16xf32>
    %19 = arith.mulf %18, %8 : vector<16x16xf32>
    %20 = arith.addf %16, %19 : vector<16x16xf32>
    %21 = vector.extract_strided_slice %9 {offsets = [0, 9], sizes = [16, 1], strides = [1, 1]} : vector<16x12xf32> to vector<16x1xf32>
    %22 = vector.broadcast %21 : vector<16x1xf32> to vector<16x16xf32>
    %23 = arith.addf %20, %22 : vector<16x16xf32>
    %24 = vector.extract_strided_slice %9 {offsets = [0, 3], sizes = [16, 1], strides = [1, 1]} : vector<16x12xf32> to vector<16x1xf32>
    %25 = vector.broadcast %24 : vector<16x1xf32> to vector<16x16xf32>
    %26 = arith.mulf %25, %6 : vector<16x16xf32>
    %27 = vector.extract_strided_slice %9 {offsets = [0, 4], sizes = [16, 1], strides = [1, 1]} : vector<16x12xf32> to vector<16x1xf32>
    %28 = vector.broadcast %27 : vector<16x1xf32> to vector<16x16xf32>
    %29 = arith.mulf %28, %7 : vector<16x16xf32>
    %30 = arith.addf %26, %29 : vector<16x16xf32>
    %31 = vector.extract_strided_slice %9 {offsets = [0, 5], sizes = [16, 1], strides = [1, 1]} : vector<16x12xf32> to vector<16x1xf32>
    %32 = vector.broadcast %31 : vector<16x1xf32> to vector<16x16xf32>
    %33 = arith.mulf %32, %8 : vector<16x16xf32>
    %34 = arith.addf %30, %33 : vector<16x16xf32>
    %35 = vector.extract_strided_slice %9 {offsets = [0, 10], sizes = [16, 1], strides = [1, 1]} : vector<16x12xf32> to vector<16x1xf32>
    %36 = vector.broadcast %35 : vector<16x1xf32> to vector<16x16xf32>
    %37 = arith.addf %34, %36 : vector<16x16xf32>
    %38 = vector.extract_strided_slice %9 {offsets = [0, 6], sizes = [16, 1], strides = [1, 1]} : vector<16x12xf32> to vector<16x1xf32>
    %39 = vector.broadcast %38 : vector<16x1xf32> to vector<16x16xf32>
    %40 = arith.mulf %39, %6 : vector<16x16xf32>
    %41 = vector.extract_strided_slice %9 {offsets = [0, 7], sizes = [16, 1], strides = [1, 1]} : vector<16x12xf32> to vector<16x1xf32>
    %42 = vector.broadcast %41 : vector<16x1xf32> to vector<16x16xf32>
    %43 = arith.mulf %42, %7 : vector<16x16xf32>
    %44 = arith.addf %40, %43 : vector<16x16xf32>
    %45 = vector.extract_strided_slice %9 {offsets = [0, 8], sizes = [16, 1], strides = [1, 1]} : vector<16x12xf32> to vector<16x1xf32>
    %46 = vector.broadcast %45 : vector<16x1xf32> to vector<16x16xf32>
    %47 = arith.mulf %46, %8 : vector<16x16xf32>
    %48 = arith.addf %44, %47 : vector<16x16xf32>
    %49 = vector.extract_strided_slice %9 {offsets = [0, 11], sizes = [16, 1], strides = [1, 1]} : vector<16x12xf32> to vector<16x1xf32>
    %50 = vector.broadcast %49 : vector<16x1xf32> to vector<16x16xf32>
    %51 = arith.addf %48, %50 : vector<16x16xf32>
    %52 = tpu.concatenate %23, %37, %51 in 1 : vector<16x16xf32>, vector<16x16xf32>, vector<16x16xf32> -> vector<16x48xf32>
    %c0_7 = arith.constant 0 : index
    %c0_8 = arith.constant 0 : index
    %53 = vector.load %arg5[%c0_7, %c0_8] : memref<16x48xf32, #tpu.memory_space<vmem>>, vector<16x48xf32>
    tpu.vector_store %arg5[%c0_7, %c0_8], %52 {strides = array<i32>} : memref<16x48xf32, #tpu.memory_space<vmem>>, vector<16x48xf32>,
    return
  }
  func.func @transform_0(%arg0: i32) -> (i32, i32) {
    %c0_i32 = arith.constant 0 : i32
    %c0_i32_0 = arith.constant 0 : i32
    return %arg0, %c0_i32 : i32, i32
  }
  func.func @transform_1(%arg0: i32) -> (i32, i32) {
    %c0_i32 = arith.constant 0 : i32
    %c0_i32_0 = arith.constant 0 : i32
    %c0_i32_1 = arith.constant 0 : i32
    return %c0_i32, %c0_i32_0 : i32, i32
  }
  func.func @transform_2(%arg0: i32) -> (i32, i32) {
    %c0_i32 = arith.constant 0 : i32
    %c0_i32_0 = arith.constant 0 : i32
    %c0_i32_1 = arith.constant 0 : i32
    return %c0_i32, %c0_i32_0 : i32, i32
  }
  func.func @transform_3(%arg0: i32) -> (i32, i32) {
    %c0_i32 = arith.constant 0 : i32
    %c0_i32_0 = arith.constant 0 : i32
    return %arg0, %c0_i32 : i32, i32
  }
  func.func @transform_4(%arg0: i32) -> (i32, i32) {
    %c0_i32 = arith.constant 0 : i32
    %c0_i32_0 = arith.constant 0 : i32
    return %arg0, %c0_i32 : i32, i32
  }
}

</mosaic_0001>

<bundles_post_ra>
// kernel: tpu_custom_call.1
= control target key start
LH: loop header
LB: loop body
LE: loop exit
PB: predicated region body
PF: predicated region fallthrough
CT: control target
= control target key end

     0   :  { %9 = vsyncpa [#allocation3], 0  ;;  %s663_s0 = inlined_call_operand.hbm [shape: f32[16,32], index: 0, kind: input, shape index: {}]   ;;  %s664_s1 = inlined_call_operand.hbm [shape: f32[32,48], index: 1, kind: input, shape index: {}]   ;;  %s665_s2 = inlined_call_operand.vmem [shape: f32[1,48], index: 2, kind: input, shape index: {}]   ;;  %s666_s3 = inlined_call_operand.hbm [shape: f32[16,12], index: 3, kind: input, shape index: {}]   ;;  %s667_s4 = inlined_call_operand.hbm [shape: f32[16,48], index: 4, kind: output, shape index: {}]  }
   0x1   :  { %10 = vsyncpa [#allocation6], 0 }
   0x2   :  { %11 = vsyncpa [#allocation4], 0  ;;  %s529_s15 = smov [#allocation5]   ;;  %s530_s17 = smov [#allocation2]  }
   0x3   :  { %s29_s16 = sshll.u32 %s529_s15, 4  ;;  %s17_s18 = sshll.u32 %s530_s17, 4  ;;  %s30_s16 = int_to_ptr.vmem [resolvable:$true] %s29_s16  ;;  %s18_s18 = int_to_ptr.vmem [resolvable:$true] %s17_s18 }
   0x4   :  { %s451_s19 = scalar_lea.vmem %s30_s16, 512  ;;  %p456_p1 = scmp.lt.s32.totalorder %s30_s16, %s30_s16 }
   0x5   :  { %p452_p0 = scmp.ne.s32.totalorder %s30_s16, %s451_s19  ;;  %p457_p2 = scmp.lt.s32.totalorder %s451_s19, %s451_s19 }
   0x7   :  { %p458_p3 = por %p457_p2, %p456_p1 }
   0x9   :  { %p459_p4 = pnand %p458_p3, %p452_p0 }
   0xb   :  { %462 = shalt.err (!%p459_p4)
}
   0xc   :  { %s531_s20 = smov 128   ;;  %s532_s21 = smov 8  }
   0xd   :  { %35 = dma.hbm_to_vmem [thread:$0]  %s664_s1, 512, %s30_s16, [#allocation6], %s531_s20, %s531_s20, %s532_s21  }
   0xe   :  { %s471_s24 = scalar_lea.vmem %s18_s18, 256  ;;  %p476_p6 = scmp.lt.s32.totalorder %s18_s18, %s18_s18 }
   0xf   :  { %p472_p5 = scmp.ne.s32.totalorder %s18_s18, %s471_s24  ;;  %p477_p7 = scmp.lt.s32.totalorder %s471_s24, %s471_s24 }
  0x11   :  { %p478_p8 = por %p477_p7, %p476_p6 }
  0x13   :  { %p479_p9 = pnand %p478_p8, %p472_p5 }
  0x15   :  { %482 = shalt.err (!%p479_p9)
}
  0x16   :  { %23 = dma.hbm_to_vmem [thread:$0]  %s663_s0, 256, %s18_s18, [#allocation3], %s531_s20, %s531_s20, %s532_s21  }
  0x17   :  { %s533_s27 = smov [#allocation7]  }
  0x18   :  { %s43_s28 = sshll.u32 %s533_s27, 4  ;;  %s44_s28 = int_to_ptr.vmem [resolvable:$true] %s43_s28 }
  0x19   :  { %s491_s29 = scalar_lea.vmem %s44_s28, 256  ;;  %p496_p11 = scmp.lt.s32.totalorder %s44_s28, %s44_s28 }
  0x1a   :  { %p492_p10 = scmp.ne.s32.totalorder %s44_s28, %s491_s29  ;;  %p497_p12 = scmp.lt.s32.totalorder %s491_s29, %s491_s29 }
  0x1c   :  { %p498_p13 = por %p497_p12, %p496_p11 }
  0x1e   :  { %p499_p0 = pnand %p498_p13, %p492_p10 }
  0x20   :  { %502 = shalt.err (!%p499_p0)
}
  0x21   :  { %49 = dma.hbm_to_vmem [thread:$0]  %s666_s3, 256, %s44_s28, [#allocation6], %s531_s20, %s531_s20, %s532_s21  }
  0x22   :  { %523 = dma.done.wait [#allocation3], 256  }
  0x23   :  { %524 = vsyncadd [#allocation3], 4294967040 }
  0x24   :  { %525 = dma.done.wait [#allocation6], 768  }
  0x25   :  { %526 = vsyncadd [#allocation6], 4294966528  ;;  %v534_v0 = vmov 7   ;;  %v535_v1 = vmov 4   ;;  %vm72_vm0 = vcmask 261120   ;;  %v64_v2 = vld [vmem:[#allocation5 + $0x18] sm:$0xff] }
  0x26   :  { %423 = vset.pattern.permute.xlu1 %v534_v0  ;;  %422 = vset.pattern.permute.xlu0 %v535_v1  ;;  %v63_v3 = vld [vmem:[#allocation5 + $0x10] sm:$0xff]  ;;  %v62_v5 = vld [vmem:[#allocation5 + $0x8] sm:$0xff]  ;;  %v595_v6 = vld [vmem:[#allocation7] sm:$0xff]  ;;  %v536_v10 = vmov 5   ;;  %v537_v11 = vmov 8   ;;  %v538_v12 = vmov 1  }
  0x27   :  { %389 = vmatprep.subr.mxu0 %v64_v2  ;;  %v59_v4 = vld [vmem:[#allocation2] sm:$0xff]  ;;  %289 = vperm.xlu1 %423, %v595_v6   ;;  %v61_v7 = vld [vmem:[#allocation5] sm:$0xff]  ;;  %v598_v8 = vld [vmem:[#allocation7 + $0x8] sm:$0xff]  ;;  %v539_v13 = vmov 3   ;;  %v540_v14 = vmov 6   ;;  %v541_v15 = vmov 10  }
  0x28   :  { %390 = vmatpush3.msra.mxu0 %v64_v2  ;;  %397 = vmatprep.mubr.msk.f32.mxu0 %vm72_vm0, %v59_v4  ;;  %v60_v9 = vld [vmem:[#allocation2 + $0x8] sm:$0xff]  ;;  %v542_v16 = vmov 11   ;;  %v543_v17 = vmov 2   ;;  %v544_v18 = vmov 0   ;;  %v380_v24 = vld [vmem:[%s665_s2] ss:$0 sm:$0xff] }
  0x29   :  { %391 = vmatprep.subr.mxu0 %v63_v3  ;;  %229 = vperm.xlu0 %422, %v595_v6   ;;  %s545_s5 = smov 112   ;;  %s546_s2 = smov 96   ;;  %v547_v44 = vmov 9   ;;  %vm354_vm1 = vcmask 130048   ;;  %vm359_vm2 = vcmask 392192  }
  0x2a   :  { %392 = vmatpush3.msra.mxu0 %v63_v3  ;;  %s548_s6 = smov 16   ;;  %s549_s7 = smov 32  }
  0x2b   :  { %393 = vmatprep.subr.mxu0 %v62_v5  ;;  %293 = vperm.xlu1 %423, %v598_v8   ;;  %s550_s8 = smov [#allocation8]  }
  0x2c   :  { %394 = vmatpush3.msra.mxu0 %v62_v5  ;;  %s367_s9 = sshll.u32 %s550_s8, 4  ;;  %s368_s9 = int_to_ptr.vmem [resolvable:$true] %s367_s9 }
  0x2d   :  { %395 = vmatprep.subr.mxu0 %v61_v7  ;;  %233 = vperm.xlu0 %422, %v598_v8   ;;  %s503_s10 = scalar_lea.vmem %s368_s9, 256  ;;  %p508_p2 = scmp.lt.s32.totalorder %s368_s9, %s368_s9 }
  0x2e   :  { %396 = vmatpush3.msra.mxu0 %v61_v7  ;;  %p504_p1 = scmp.ne.s32.totalorder %s368_s9, %s503_s10  ;;  %p509_p3 = scmp.lt.s32.totalorder %s503_s10, %s503_s10 }
  0x2f   :  { %398 = vmatmul.mubr.msk.f32.vlgmr.msra.gmra.mxu0 %vm72_vm0, %v60_v9  ;;  %425 = vset.pattern.permute.xlu1 %v536_v10 }
  0x30   :  { %253 = vperm.xlu1 %425, %v598_v8   ;;  %p510_p4 = por %p509_p3, %p508_p2 }
  0x31   :  { %424 = vset.pattern.permute.xlu0 %v536_v10 }
  0x32   :  { %249 = vperm.xlu0 %424, %v595_v6   ;;  %p511_p5 = pnand %p510_p4, %p504_p1 }
  0x34   :  { %426 = vset.pattern.permute.xlu1 %v537_v11 }
  0x35   :  { %309 = vperm.xlu1 %426, %v595_v6  }
  0x36   :  { %427 = vset.pattern.permute.xlu0 %v537_v11 }
  0x37   :  { %313 = vperm.xlu0 %427, %v598_v8  }
  0x39   :  { %428 = vset.pattern.permute.xlu1 %v538_v12 }
  0x3a   :  { %169 = vperm.xlu1 %428, %v595_v6  }
  0x3b   :  { %429 = vset.pattern.permute.xlu0 %v539_v13 }
  0x3c   :  { %219 = vperm.xlu0 %429, %v595_v6  }
  0x3e   :  { %173 = vperm.xlu1 %428, %v598_v8  }
  0x40   :  { %432 = vset.pattern.permute.xlu0 %v540_v14 }
  0x41   :  { %283 = vperm.xlu0 %432, %v598_v8  }
  0x42   :  { %430 = vset.pattern.permute.xlu1 %v539_v13 }
  0x43   :  { %223 = vperm.xlu1 %430, %v598_v8  }
  0x45   :  { %434 = vset.pattern.permute.xlu0 %v541_v15 }
  0x46   :  { %269 = vperm.xlu0 %434, %v595_v6  }
  0x47   :  { %431 = vset.pattern.permute.xlu1 %v540_v14 }
  0x48   :  { %279 = vperm.xlu1 %431, %v595_v6  }
  0x4a   :  { %437 = vset.pattern.permute.xlu0 %v542_v16 }
  0x4b   :  { %333 = vperm.xlu0 %437, %v598_v8  }
  0x4c   :  { %433 = vset.pattern.permute.xlu1 %v543_v17 }
  0x4d   :  { %189 = vperm.xlu1 %433, %v595_v6  }
  0x4f   :  { %438 = vset.pattern.permute.xlu0 %v544_v18 }
  0x51   :  { %193 = vperm.xlu1 %433, %v598_v8  }
  0x55   :  { %435 = vset.pattern.permute.xlu1 %v541_v15 }
  0x56   :  { %273 = vperm.xlu1 %435, %v598_v8  }
  0x5a   :  { %436 = vset.pattern.permute.xlu1 %v542_v16 }
  0x5b   :  { %329 = vperm.xlu1 %436, %v595_v6  }
  0x5f   :  { %439 = vset.pattern.permute.xlu1 %v544_v18 }
  0xa2   :  { %v290_v19 = vpop.permute.xlu1 %289 }
  0xa4   :  { %v230_v23 = vpop.permute.xlu0 %229 }
  0xa6   :  { %v294_v20 = vpop.permute.xlu1 %293 }
  0xa8   :  { %v234_v27 = vpop.permute.xlu0 %233 }
  0xab   :  { %v254_v21 = vpop.permute.xlu1 %253 }
  0xad   :  { %v250_v34 = vpop.permute.xlu0 %249 }
  0xb0   :  { %v310_v22 = vpop.permute.xlu1 %309 }
  0xb2   :  { %v314_v42 = vpop.permute.xlu0 %313 }
  0xb5   :  { %v170_v25 = vpop.permute.xlu1 %169 }
  0xb7   :  { %v220_v51 = vpop.permute.xlu0 %219 }
  0xb9   :  { %v174_v33 = vpop.permute.xlu1 %173 }
  0xbc   :  { %v284_v52 = vpop.permute.xlu0 %283 }
  0xbe   :  { %v224_v38 = vpop.permute.xlu1 %223 }
  0xc1   :  { %v270_v54 = vpop.permute.xlu0 %269 }
  0xc3   :  { %v280_v41 = vpop.permute.xlu1 %279 }
  0xc6   :  { %v334_v56 = vpop.permute.xlu0 %333 }
  0xc8   :  { %v190_v45 = vpop.permute.xlu1 %189 }
  0xcc   :  { %v194_v48 = vpop.permute.xlu1 %193 }
  0xd1   :  { %v274_v53 = vpop.permute.xlu1 %273 }
  0xd6   :  { %v330_v55 = vpop.permute.xlu1 %329 }
  0xef   :  { %v399_v26 = vpop.f32.mrf.mxu0 }
  0xf0   :  { %v623_v28 = vadd.f32 %v399_v26, %v380_v24 }
  0xf1   :  { %v145_v29 = vpop.f32.mrf.mxu0 }
  0xf2   :  { %v297_v30 = vmul.f32 %v294_v20, %v623_v28  ;;  %v626_v31 = vadd.f32 %v380_v24, %v145_v29  ;;  %v237_v32 = vmul.f32 %v234_v27, %v623_v28  ;;  %v257_v35 = vmul.f32 %v254_v21, %v623_v28 }
  0xf3   :  { %v317_v43 = vmul.f32 %v314_v42, %v623_v28  ;;  %v177_v47 = vmul.f32 %v174_v33, %v623_v28  ;;  %v197_v49 = vmul.f32 %v194_v48, %v623_v28  ;;  %v227_v59 = vmul.f32 %v224_v38, %v623_v28 }
  0xf4   :  { %302 = vrot.lane.b32.xlu1 %v297_v30, %s545_s5  ;;  %242 = vrot.lane.b32.xlu0 %v237_v32, %s545_s5  ;;  %v256_v36 = vmul.f32 %v250_v34, %v626_v31  ;;  %v236_v37 = vmul.f32 %v230_v23, %v626_v31  ;;  %v316_v39 = vmul.f32 %v310_v22, %v626_v31 }
  0xf5   :  { %v296_v40 = vmul.f32 %v290_v19, %v626_v31  ;;  %v196_v46 = vmul.f32 %v190_v45, %v626_v31  ;;  %v176_v50 = vmul.f32 %v170_v25, %v626_v31  ;;  %v226_v0 = vmul.f32 %v220_v51, %v626_v31 }
  0xf6   :  { %v286_v5 = vmul.f32 %v280_v41, %v626_v31  ;;  %v287_v7 = vmul.f32 %v284_v52, %v623_v28 }
  0xf8   :  { %262 = vrot.lane.b32.xlu1 %v257_v35, %s546_s2  ;;  %260 = vrot.lane.b32.xlu0 %v256_v36, %s546_s2 }
  0xfc   :  { %240 = vrot.lane.b32.xlu1 %v236_v37, %s545_s5  ;;  %320 = vrot.lane.b32.xlu0 %v316_v39, %s546_s2 }
 0x100   :  { %300 = vrot.lane.b32.xlu1 %v296_v40, %s545_s5  ;;  %158 = vperm.xlu0 %438, %v595_v6  }
 0x104   :  { %322 = vrot.lane.b32.xlu1 %v317_v43, %s546_s2  ;;  %441 = vset.pattern.permute.xlu0 %v547_v44 }
 0x105   :  { %213 = vperm.xlu0 %441, %v598_v8  }
 0x108   :  { %163 = vperm.xlu1 %439, %v598_v8  }
 0x109   :  { %200 = vrot.lane.b32.xlu0 %v196_v46, %s546_s2 }
 0x10a   :  { %442 = vset.pattern.permute.xlu0 %v542_v16 }
 0x10c   :  { %440 = vset.pattern.permute.xlu1 %v547_v44 }
 0x10d   :  { %209 = vperm.xlu1 %440, %v595_v6  }
 0x111   :  { %182 = vrot.lane.b32.xlu1 %v177_v47, %s545_s5 }
 0x115   :  { %202 = vrot.lane.b32.xlu1 %v197_v49, %s546_s2 }
 0x119   :  { %180 = vrot.lane.b32.xlu1 %v176_v50, %s545_s5 }
 0x166   :  { %v303_v57 = vpop.permute.xlu1 %302  ;;  %v243_v58 = vpop.permute.xlu0 %242 }
 0x167   :  { %v247_v60 = vadd.f32 %v243_v58, %v227_v59  ;;  %v307_v11 = vadd.f32 %v303_v57, %v287_v7 }
 0x16a   :  { %v263_v61 = vpop.permute.xlu1 %262  ;;  %v261_v1 = vpop.permute.xlu0 %260 }
 0x16b   :  { %v267_v62 = vadd.f32 %v263_v61, %v247_v60 }
 0x16d   :  { %v277_v63 = vadd.f32 %v274_v53, %v267_v62 }
 0x16e   :  { %v241_v2 = vpop.permute.xlu1 %240  ;;  %v321_v10 = vpop.permute.xlu0 %320 }
 0x16f   :  { %v246_v3 = vadd.f32 %v241_v2, %v226_v0  ;;  %342 = vrot.lane.b32.xlu1 %v277_v63, %s548_s6 }
 0x171   :  { %v266_v4 = vadd.f32 %v261_v1, %v246_v3 }
 0x172   :  { %v301_v6 = vpop.permute.xlu1 %300 }
 0x173   :  { %v306_v8 = vadd.f32 %v301_v6, %v286_v5  ;;  %v276_v9 = vadd.f32 %v270_v54, %v266_v4 }
 0x175   :  { %v326_v12 = vadd.f32 %v321_v10, %v306_v8  ;;  %340 = vrot.lane.b32.xlu0 %v276_v9, %s548_s6 }
 0x176   :  { %v323_v13 = vpop.permute.xlu1 %322 }
 0x177   :  { %v327_v14 = vadd.f32 %v323_v13, %v307_v11  ;;  %v336_v15 = vadd.f32 %v330_v55, %v326_v12 }
 0x179   :  { %v337_v16 = vadd.f32 %v334_v56, %v327_v14  ;;  %348 = vrot.lane.b32.xlu0 %v336_v15, %s549_s7 }
 0x17b   :  { %350 = vrot.lane.b32.xlu1 %v337_v16, %s549_s7  ;;  %v159_v20 = vpop.permute.xlu0 %158 }
 0x17c   :  { %v166_v24 = vmul.f32 %v159_v20, %v626_v31 }
 0x180   :  { %v214_v22 = vpop.permute.xlu0 %213 }
 0x183   :  { %v164_v17 = vpop.permute.xlu1 %163 }
 0x184   :  { %v167_v26 = vmul.f32 %v164_v17, %v623_v28  ;;  %v201_v27 = vpop.permute.xlu0 %200 }
 0x188   :  { %v210_v18 = vpop.permute.xlu1 %209 }
 0x18c   :  { %v183_v19 = vpop.permute.xlu1 %182 }
 0x18d   :  { %v187_v29 = vadd.f32 %v183_v19, %v167_v26 }
 0x190   :  { %v203_v21 = vpop.permute.xlu1 %202 }
 0x191   :  { %v207_v32 = vadd.f32 %v203_v21, %v187_v29 }
 0x193   :  { %v217_v36 = vadd.f32 %v214_v22, %v207_v32 }
 0x194   :  { %v181_v23 = vpop.permute.xlu1 %180 }
 0x195   :  { %v186_v25 = vadd.f32 %v181_v23, %v166_v24 }
 0x197   :  { %v206_v30 = vadd.f32 %v201_v27, %v186_v25 }
 0x199   :  { %v216_v34 = vadd.f32 %v210_v18, %v206_v30 }
 0x1e1   :  { %v343_v35 = vpop.permute.xlu1 %342 }
 0x1e2   :  { %v356_v31 = vsel %vm354_vm1, %v217_v36, %v343_v35 }
 0x1e7   :  { %v341_v33 = vpop.permute.xlu0 %340 }
 0x1e8   :  { %v355_v37 = vsel %vm354_vm1, %v216_v34, %v341_v33 }
 0x1eb   :  { %v349_v38 = vpop.permute.xlu0 %348 }
 0x1ec   :  { %v357_v39 = vsel %vm72_vm0, %v355_v37, %v349_v38 }
 0x1ed   :  { %v351_v40 = vpop.permute.xlu1 %350  ;;  %360 = vst.msk [vmem:[#allocation8] sm:$0xff] %vm359_vm2, %v357_v39 }
 0x1ee   :  { %v358_v28 = vsel %vm72_vm0, %v356_v31, %v351_v40 }
 0x1ef   :  { %361 = vst.msk [vmem:[#allocation8 + $0x8] sm:$0xff] %vm359_vm2, %v358_v28 }
 0x1f0   :  { %514 = shalt.err (!%p511_p5)
}
 0x1f1   :  { %373 = dma.vmem_to_hbm [thread:$0]  %s368_s9, 256, %s667_s4, [#allocation4], %s531_s20, %s531_s20, %s532_s21  }
 0x1f2   :  { %527 = dma.done.wait [#allocation4], 256  }
 0x1f3   :  { %528 = vsyncadd [#allocation4], 4294967040 }
 0x1f4   :  { %377 = vsyncpa [#allocation3], 1 }
 0x1f5   :  { %378 = vsyncpa [#allocation6], 1 }
 0x1f6   :  { %379 = vsyncpa [#allocation4], 1 }

</bundles_post_ra>
